<compile_context>
chip_gen: v7x
topology: tpu7x:2x2x1
jax: 0.10.0
libtpu: 0.0.40
codegen_flags: <defaults>
</compile_context>

<pallas_src>
import functools

import numpy as np
import jax
import jax.numpy as jnp
from jax import lax
from jax.experimental import pallas as pl
from jax.experimental.pallas import tpu as pltpu


def _round_up(x, m):
    return ((x + m - 1) // m) * m


def _cdiv(a, b):
    return -(-a // b)


def _pick_tm(rows):
    # minimal row padding, cap ~256, and >= 2 grid steps when rows allow (v7x megacore)
    steps = max(2, _cdiv(rows, 256))
    tm = _round_up(_cdiv(rows, steps), 8)
    return max(8, min(tm, _round_up(rows, 8)))


def _pick_tn(fft_size):
    if fft_size <= 1024:
        return fft_size
    for cand in (1024, 512, 256):
        if fft_size % cand == 0:
            return cand
    return fft_size


def _build_matrices(filter_size, fft_size, hop, hop_pad, nb_pad):
    """Precompute packed DFT matrices (bf16) folding the whole FIR design in.

    Packing of the spectral axis (width = fft_size, K = fft_size // 2):
      cols 0..K-1   : real parts of rfft bins 0..K-1
      col  K        : real part of the Nyquist bin K
      cols K+1..2K-1: imag parts of rfft bins 1..K-1     (DC / Nyquist imag are zero)
    Returns:
      dcs  [hop_pad, fft_size] : hop-length noise frame -> packed rfft
      mri  [nb_pad,  fft_size] : magnitudes -> windowed FIR -> packed rfft
      ics1 [K, fft_size]       : irfft rows for Re(Y) bins 0..K-1
      ics2 [K, fft_size]       : irfft rows for [Re(Y)_K, Im(Y) bins 1..K-1]
    """
    n_bins = filter_size // 2 + 1
    ir_len = filter_size - 1
    k_half = fft_size // 2
    n_rfft = k_half + 1

    # magnitudes -> zero-phase IRFFT (length ir_len) -> fftshift -> Hann window
    bins = np.arange(n_bins, dtype=np.float64)[:, None]
    w_b = np.where((np.arange(n_bins) == 0) | (np.arange(n_bins) == n_bins - 1),
                   1.0, 2.0)[:, None]
    j_shift = ((np.arange(ir_len) + ir_len // 2) % ir_len).astype(np.float64)[None, :]
    design = (w_b / ir_len) * np.cos(2.0 * np.pi * bins * j_shift / ir_len)
    hann = 0.5 - 0.5 * np.cos(2.0 * np.pi * np.arange(ir_len, dtype=np.float64) / ir_len)
    design = design * hann[None, :]                               # [n_bins, ir_len]

    k = np.arange(n_rfft, dtype=np.float64)[None, :]

    # rfft (length fft_size) of the windowed FIR, folded into the design matrix
    jj = np.arange(ir_len, dtype=np.float64)[:, None]
    ang_ir = 2.0 * np.pi * jj * k / fft_size
    mr = design @ np.cos(ang_ir)                                  # [n_bins, n_rfft]
    mi = design @ (-np.sin(ang_ir))
    mri = np.zeros((nb_pad, fft_size), np.float64)
    mri[:n_bins, :k_half] = mr[:, :k_half]
    mri[:n_bins, k_half] = mr[:, k_half]
    mri[:n_bins, k_half + 1:] = mi[:, 1:k_half]

    # rfft of the hop-length noise frame (implicit zero pad to fft_size)
    t = np.arange(hop, dtype=np.float64)[:, None]
    ang_t = 2.0 * np.pi * t * k / fft_size
    dc = np.cos(ang_t)
    ds = -np.sin(ang_t)                                           # [hop, n_rfft]
    dcs = np.zeros((hop_pad, fft_size), np.float64)
    dcs[:hop, :k_half] = dc[:, :k_half]
    dcs[:hop, k_half] = dc[:, k_half]
    dcs[:hop, k_half + 1:] = ds[:, 1:k_half]

    # irfft back to fft_size time samples, rows packed to match the spectral layout
    kk = np.arange(n_rfft, dtype=np.float64)[:, None]
    tt = np.arange(fft_size, dtype=np.float64)[None, :]
    w_k = np.where((np.arange(n_rfft) == 0) | (np.arange(n_rfft) == n_rfft - 1),
                   1.0, 2.0)[:, None]
    ic = (w_k / fft_size) * np.cos(2.0 * np.pi * kk * tt / fft_size)
    is_ = -(w_k / fft_size) * np.sin(2.0 * np.pi * kk * tt / fft_size)
    ics1 = ic[:k_half, :]
    ics2 = np.concatenate([ic[k_half:k_half + 1, :], is_[1:k_half, :]], axis=0)

    def to_bf16(x):
        return jnp.asarray(x.astype(np.float32)).astype(jnp.bfloat16)

    return to_bf16(dcs), to_bf16(mri), to_bf16(ics1), to_bf16(ics2)


def _filtered_noise_kernel(noise_ref, freq_ref, dcs_ref, mri_ref, ics1_ref, ics2_ref,
                           out_ref, y1_sc, y2_sc, *, k_half):
    # All matmul operands are bf16; accumulation is f32 (preferred_element_type).
    @pl.when(pl.program_id(1) == 0)
    def _():
        # packed rfft of the noise frames and of the per-frame FIR
        a = jnp.dot(noise_ref[...], dcs_ref[...], preferred_element_type=jnp.float32)
        b = jnp.dot(freq_ref[...], mri_ref[...], preferred_element_type=jnp.float32)
        a_f, a_s = a[:, :k_half], a[:, k_half:]          # 128-lane-aligned splits
        b_f, b_s = b[:, :k_half], b[:, k_half:]
        u = a_f * b_f                                    # re*re           (bins 0..K-1)
        v = a_s * b_s                                    # col0: reK*reK, cols1..: im*im
        w = a_f * b_s + a_s * b_f                        # cols1..: re*im + im*re
        first = lax.broadcasted_iota(jnp.int32, u.shape, 1) == 0
        y1_sc[...] = (u - jnp.where(first, 0.0, v)).astype(y1_sc.dtype)   # Re(Y) 0..K-1
        y2_sc[...] = jnp.where(first, v, w).astype(y2_sc.dtype)           # [ReY_K, Im(Y)]

    # irfft tile: y1 @ IC[0:K, n-tile] + y2 @ [IC[K]; IS[1:K]][:, n-tile]
    out_ref[...] = (
        jnp.dot(y1_sc[...], ics1_ref[...], preferred_element_type=jnp.float32)
        + jnp.dot(y2_sc[...], ics2_ref[...], preferred_element_type=jnp.float32))


def _vmem_limit_bytes(tm, tn, hop_pad, nb_pad, k_half, fft_size):
    const = (hop_pad + nb_pad) * fft_size * 2 + 2 * k_half * tn * 2   # bf16 constants
    tiles = tm * (hop_pad + nb_pad) * 2 + tm * tn * 4                 # bf16 in / f32 out
    scratch = 2 * tm * k_half * 2
    est = 2 * (const + tiles) + scratch                               # double-buffer slack
    if est <= 24 * 2 ** 20:
        return None                                                   # defaults are plenty
    return int(min(110 * 2 ** 20, est + 8 * 2 ** 20))


def _overlap_add(frames, hop, n_samples, ir_len):
    """Strip-view overlap-add (shifted .at[].add on views, no full-size pads)."""
    b, f, length = frames.shape
    n_strips = _cdiv(length, hop)
    pad = n_strips * hop - length
    if pad:
        frames = jnp.pad(frames, ((0, 0), (0, 0), (0, pad)))
    strips = frames.reshape(b, f, n_strips, hop)
    total = f + n_strips - 1
    acc = jnp.zeros((b, total, hop), jnp.float32)
    for s in range(n_strips):
        acc = acc.at[:, s:s + f, :].add(strips[:, :, s, :])
    flat = acc.reshape(b, total * hop)
    # 'same' crop: compensate FIR group delay.
    # TODO(synk): true linear-phase delay is half-integer for even ir_len; integer floor
    # kept for parity with the previously validated implementation.
    delay = (ir_len - 1) // 2
    return flat[:, delay:delay + n_samples]


def filtered_noise(freq_response, n_samples, *, filter_size, amplitude=1.0, noise_key=None):
    """Pallas implementation of FilteredNoise.forward. Returns (audio, noise)."""
    batch, n_frames, n_bins = freq_response.shape
    assert n_bins == filter_size // 2 + 1
    assert n_samples % n_frames == 0
    hop = n_samples // n_frames
    ir_len = filter_size - 1
    # frame FFT size: >= linear-conv length, multiple of 256 so K = fft_size/2 is 128-aligned
    fft_size = _round_up(hop + ir_len - 1, 256)
    k_half = fft_size // 2
    hop_pad = _round_up(hop, 128)
    nb_pad = _round_up(n_bins, 128)

    if noise_key is None:
        noise_key = jax.random.PRNGKey(0)
    # TODO(synk): torch.rand's exact RNG stream is not reproducible; jax.random.uniform used.
    noise = (jax.random.uniform(noise_key, (batch, n_frames, hop), dtype=jnp.float32) * 2.0
             - 1.0) * float(amplitude)

    dcs, mri, ics1, ics2 = _build_matrices(filter_size, fft_size, hop, hop_pad, nb_pad)

    rows = batch * n_frames
    tm = _pick_tm(rows)
    rows_pad = _round_up(rows, tm)
    tn = _pick_tn(fft_size)

    freq_flat = jnp.zeros((rows_pad, nb_pad), jnp.bfloat16)
    freq_flat = freq_flat.at[:rows, :n_bins].set(
        freq_response.reshape(rows, n_bins).astype(jnp.bfloat16))
    noise_flat = jnp.zeros((rows_pad, hop_pad), jnp.bfloat16)
    noise_flat = noise_flat.at[:rows, :hop].set(noise.reshape(rows, hop).astype(jnp.bfloat16))

    grid = (rows_pad // tm, fft_size // tn)

    frames_flat = pl.pallas_call(
        functools.partial(_filtered_noise_kernel, k_half=k_half),
        out_shape=jax.ShapeDtypeStruct((rows_pad, fft_size), jnp.float32),
        grid_spec=pltpu.PrefetchScalarGridSpec(
            num_scalar_prefetch=0,
            grid=grid,
            in_specs=[
                pl.BlockSpec((tm, hop_pad), lambda i, n: (i, 0)),
                pl.BlockSpec((tm, nb_pad), lambda i, n: (i, 0)),
                pl.BlockSpec((hop_pad, fft_size), lambda i, n: (0, 0)),
                pl.BlockSpec((nb_pad, fft_size), lambda i, n: (0, 0)),
                pl.BlockSpec((k_half, tn), lambda i, n: (0, n)),
                pl.BlockSpec((k_half, tn), lambda i, n: (0, n)),
            ],
            out_specs=pl.BlockSpec((tm, tn), lambda i, n: (i, n)),
            scratch_shapes=[pltpu.VMEM((tm, k_half), jnp.bfloat16),
                            pltpu.VMEM((tm, k_half), jnp.bfloat16)],
        ),
        compiler_params=pltpu.CompilerParams(
            dimension_semantics=("parallel", "arbitrary"),
            vmem_limit_bytes=_vmem_limit_bytes(tm, tn, hop_pad, nb_pad, k_half, fft_size)),
    )(noise_flat, freq_flat, dcs, mri, ics1, ics2)

    frames = frames_flat[:rows].reshape(batch, n_frames, fft_size)
    audio = _overlap_add(frames, hop, n_samples, ir_len)
    return audio, noise


def _reference_dsp(freq_response, noise, n_samples, filter_size):
    """Independent pure-JAX DSP reference (jnp.fft based, no shared matrices)."""
    batch, n_frames, hop = noise.shape
    ir_len = filter_size - 1
    ir = jnp.fft.irfft(freq_response.astype(jnp.complex64), n=ir_len, axis=-1)
    ir = jnp.fft.fftshift(ir, axes=-1)
    win = 0.5 - 0.5 * jnp.cos(2.0 * jnp.pi * jnp.arange(ir_len, dtype=jnp.float32) / ir_len)
    ir = ir * win[None, None, :]
    fft_size = int(2 ** int(np.ceil(np.log2(hop + ir_len - 1))))
    spec = jnp.fft.rfft(noise, n=fft_size, axis=-1) * jnp.fft.rfft(ir, n=fft_size, axis=-1)
    frames = jnp.fft.irfft(spec, n=fft_size, axis=-1)
    out_len = (n_frames - 1) * hop + fft_size
    audio = jnp.zeros((batch, out_len), jnp.float32)
    for f in range(n_frames):
        audio = audio.at[:, f * hop:f * hop + fft_size].add(frames[:, f])
    delay = (ir_len - 1) // 2
    return audio[:, delay:delay + n_samples]


if __name__ == "__main__":
    filter_size = 65                 # -> 33 magnitude bins, 64-tap linear-phase FIR
    amplitude = 1.0
    batch, n_frames, n_samples = 2, 4, 512      # hop = 128
    n_bins = filter_size // 2 + 1

    key = jax.random.PRNGKey(0)
    k_freq, k_noise = jax.random.split(key)
    raw = jax.random.normal(k_freq, (batch, n_frames, n_bins), dtype=jnp.float32)
    # exp_sigmoid-style magnitudes in (0, 2), per the module's param_range / param_types
    freq_response = 2.0 * jax.nn.sigmoid(raw) ** jnp.log(10.0) + 1e-7

    audio, noise = filtered_noise(freq_response, n_samples, filter_size=filter_size,
                                  amplitude=amplitude, noise_key=k_noise)
    audio = jax.block_until_ready(audio)
    assert audio.shape == (batch, n_samples)

    ref = jax.block_until_ready(_reference_dsp(freq_response, noise, n_samples, filter_size))
    a_np = np.asarray(audio, dtype=np.float64)
    r_np = np.asarray(ref, dtype=np.float64)
    rel_l2 = np.linalg.norm(a_np - r_np) / max(np.linalg.norm(r_np), 1e-12)
    assert rel_l2 < 2e-2, f"relative L2 error too large: {rel_l2}"
    np.testing.assert_allclose(a_np, r_np, rtol=5e-2, atol=5e-2)   # bf16-MXU tolerance
    print("KERNEL_OK")
</pallas_src>

<mosaic_0001>
module attributes {stable_mosaic.version = 11 : i64} {
  func.func @_filtered_noise_kernel(%arg0: i32, %arg1: i32, %arg2: memref<8x128xbf16, #tpu.memory_space<vmem>>, %arg3: memref<8x128xbf16, #tpu.memory_space<vmem>>, %arg4: memref<128x256xbf16, #tpu.memory_space<vmem>>, %arg5: memref<128x256xbf16, #tpu.memory_space<vmem>>, %arg6: memref<128x256xbf16, #tpu.memory_space<vmem>>, %arg7: memref<128x256xbf16, #tpu.memory_space<vmem>>, %arg8: memref<8x256xf32, #tpu.memory_space<vmem>>, %arg9: memref<8x128xbf16, #tpu.memory_space<vmem>>, %arg10: memref<8x128xbf16, #tpu.memory_space<vmem>>) attributes {dimension_semantics = [#tpu.dimension_semantics<parallel>, #tpu.dimension_semantics<arbitrary>], iteration_bounds = array<i64: 1, 1>, scalar_prefetch = 0 : i64, scratch_operands = 2 : i64, tpu.core_type = #tpu.core_type<tc>, window_params = [{transform_indices = @transform_0, window_bounds = array<i64: 8, 128>}, {transform_indices = @transform_1, window_bounds = array<i64: 8, 128>}, {pipeline_mode = #tpu.pipeline_mode<synchronous>, transform_indices = @transform_2, window_bounds = array<i64: 128, 256>}, {pipeline_mode = #tpu.pipeline_mode<synchronous>, transform_indices = @transform_3, window_bounds = array<i64: 128, 256>}, {transform_indices = @transform_4, window_bounds = array<i64: 128, 256>}, {transform_indices = @transform_5, window_bounds = array<i64: 128, 256>}, {transform_indices = @transform_6, window_bounds = array<i64: 8, 256>}]} {
    %c0_i32 = arith.constant 0 : i32
    %0 = arith.cmpi eq, %arg1, %c0_i32 : i32
    %1 = arith.extui %0 : i1 to i32
    %c0_i32_0 = arith.constant 0 : i32
    %2 = arith.cmpi ne, %1, %c0_i32_0 : i32
    scf.if %2 {
      %c0_11 = arith.constant 0 : index
      %c0_12 = arith.constant 0 : index
      %11 = vector.load %arg2[%c0_11, %c0_12] : memref<8x128xbf16, #tpu.memory_space<vmem>>, vector<8x128xbf16>
      %c0_13 = arith.constant 0 : index
      %c0_14 = arith.constant 0 : index
      %12 = vector.load %arg4[%c0_13, %c0_14] : memref<128x256xbf16, #tpu.memory_space<vmem>>, vector<128x256xbf16>
      %cst_15 = arith.constant dense<0.000000e+00> : vector<8x256xf32>
      %13 = tpu.matmul %11, %12, %cst_15 {dimension_numbers = #tpu.dot_dimension_numbers<[1], [0], [0], [1], [0, 0, 1, 1], [], []>} : vector<8x128xbf16>, vector<128x256xbf16>, vector<8x256xf32> -> vector<8x256xf32>
      %c0_16 = arith.constant 0 : index
      %c0_17 = arith.constant 0 : index
      %14 = vector.load %arg3[%c0_16, %c0_17] : memref<8x128xbf16, #tpu.memory_space<vmem>>, vector<8x128xbf16>
      %c0_18 = arith.constant 0 : index
      %c0_19 = arith.constant 0 : index
      %15 = vector.load %arg5[%c0_18, %c0_19] : memref<128x256xbf16, #tpu.memory_space<vmem>>, vector<128x256xbf16>
      %cst_20 = arith.constant dense<0.000000e+00> : vector<8x256xf32>
      %16 = tpu.matmul %14, %15, %cst_20 {dimension_numbers = #tpu.dot_dimension_numbers<[1], [0], [0], [1], [0, 0, 1, 1], [], []>} : vector<8x128xbf16>, vector<128x256xbf16>, vector<8x256xf32> -> vector<8x256xf32>
      %17 = vector.extract_strided_slice %13 {offsets = [0, 0], sizes = [8, 128], strides = [1, 1]} : vector<8x256xf32> to vector<8x128xf32>
      %18 = vector.extract_strided_slice %13 {offsets = [0, 128], sizes = [8, 128], strides = [1, 1]} : vector<8x256xf32> to vector<8x128xf32>
      %19 = vector.extract_strided_slice %16 {offsets = [0, 0], sizes = [8, 128], strides = [1, 1]} : vector<8x256xf32> to vector<8x128xf32>
      %20 = vector.extract_strided_slice %16 {offsets = [0, 128], sizes = [8, 128], strides = [1, 1]} : vector<8x256xf32> to vector<8x128xf32>
      %21 = arith.mulf %17, %19 : vector<8x128xf32>
      %22 = arith.mulf %18, %20 : vector<8x128xf32>
      %23 = arith.mulf %17, %20 : vector<8x128xf32>
      %24 = arith.mulf %18, %19 : vector<8x128xf32>
      %25 = arith.addf %23, %24 : vector<8x128xf32>
      %26 = tpu.iota {dimensions = array<i32: 1>} : vector<8x128xi32>
      %c0_i32_21 = arith.constant 0 : i32
      %27 = vector.broadcast %c0_i32_21 : i32 to vector<8x128xi32>
      %28 = arith.cmpi eq, %26, %27 : vector<8x128xi32>
      %cst_22 = arith.constant 0.000000e+00 : f32
      %29 = vector.broadcast %cst_22 : f32 to vector<8x128xf32>
      %30 = arith.select %28, %29, %22 : vector<8x128xi1>, vector<8x128xf32>
      %31 = arith.subf %21, %30 : vector<8x128xf32>
      %32 = arith.truncf %31 : vector<8x128xf32> to vector<8x128xbf16>
      %c0_23 = arith.constant 0 : index
      %c0_24 = arith.constant 0 : index
      %33 = vector.load %arg9[%c0_23, %c0_24] : memref<8x128xbf16, #tpu.memory_space<vmem>>, vector<8x128xbf16>
      tpu.vector_store %arg9[%c0_23, %c0_24], %32 {strides = array<i32>} : memref<8x128xbf16, #tpu.memory_space<vmem>>, vector<8x128xbf16>,
      %34 = arith.select %28, %22, %25 : vector<8x128xi1>, vector<8x128xf32>
      %35 = arith.truncf %34 : vector<8x128xf32> to vector<8x128xbf16>
      %c0_25 = arith.constant 0 : index
      %c0_26 = arith.constant 0 : index
      %36 = vector.load %arg10[%c0_25, %c0_26] : memref<8x128xbf16, #tpu.memory_space<vmem>>, vector<8x128xbf16>
      tpu.vector_store %arg10[%c0_25, %c0_26], %35 {strides = array<i32>} : memref<8x128xbf16, #tpu.memory_space<vmem>>, vector<8x128xbf16>,
    } else {
    }
    %c0 = arith.constant 0 : index
    %c0_1 = arith.constant 0 : index
    %3 = vector.load %arg9[%c0, %c0_1] : memref<8x128xbf16, #tpu.memory_space<vmem>>, vector<8x128xbf16>
    %c0_2 = arith.constant 0 : index
    %c0_3 = arith.constant 0 : index
    %4 = vector.load %arg6[%c0_2, %c0_3] : memref<128x256xbf16, #tpu.memory_space<vmem>>, vector<128x256xbf16>
    %cst = arith.constant dense<0.000000e+00> : vector<8x256xf32>
    %5 = tpu.matmul %3, %4, %cst {dimension_numbers = #tpu.dot_dimension_numbers<[1], [0], [0], [1], [0, 0, 1, 1], [], []>} : vector<8x128xbf16>, vector<128x256xbf16>, vector<8x256xf32> -> vector<8x256xf32>
    %c0_4 = arith.constant 0 : index
    %c0_5 = arith.constant 0 : index
    %6 = vector.load %arg10[%c0_4, %c0_5] : memref<8x128xbf16, #tpu.memory_space<vmem>>, vector<8x128xbf16>
    %c0_6 = arith.constant 0 : index
    %c0_7 = arith.constant 0 : index
    %7 = vector.load %arg7[%c0_6, %c0_7] : memref<128x256xbf16, #tpu.memory_space<vmem>>, vector<128x256xbf16>
    %cst_8 = arith.constant dense<0.000000e+00> : vector<8x256xf32>
    %8 = tpu.matmul %6, %7, %cst_8 {dimension_numbers = #tpu.dot_dimension_numbers<[1], [0], [0], [1], [0, 0, 1, 1], [], []>} : vector<8x128xbf16>, vector<128x256xbf16>, vector<8x256xf32> -> vector<8x256xf32>
    %9 = arith.addf %5, %8 : vector<8x256xf32>
    %c0_9 = arith.constant 0 : index
    %c0_10 = arith.constant 0 : index
    %10 = vector.load %arg8[%c0_9, %c0_10] : memref<8x256xf32, #tpu.memory_space<vmem>>, vector<8x256xf32>
    tpu.vector_store %arg8[%c0_9, %c0_10], %9 {strides = array<i32>} : memref<8x256xf32, #tpu.memory_space<vmem>>, vector<8x256xf32>,
    return
  }
  func.func @transform_0(%arg0: i32, %arg1: i32) -> (i32, i32) {
    %c0_i32 = arith.constant 0 : i32
    %c0_i32_0 = arith.constant 0 : i32
    return %arg0, %c0_i32 : i32, i32
  }
  func.func @transform_1(%arg0: i32, %arg1: i32) -> (i32, i32) {
    %c0_i32 = arith.constant 0 : i32
    %c0_i32_0 = arith.constant 0 : i32
    return %arg0, %c0_i32 : i32, i32
  }
  func.func @transform_2(%arg0: i32, %arg1: i32) -> (i32, i32) {
    %c0_i32 = arith.constant 0 : i32
    %c0_i32_0 = arith.constant 0 : i32
    %c0_i32_1 = arith.constant 0 : i32
    return %c0_i32, %c0_i32_0 : i32, i32
  }
  func.func @transform_3(%arg0: i32, %arg1: i32) -> (i32, i32) {
    %c0_i32 = arith.constant 0 : i32
    %c0_i32_0 = arith.constant 0 : i32
    %c0_i32_1 = arith.constant 0 : i32
    return %c0_i32, %c0_i32_0 : i32, i32
  }
  func.func @transform_4(%arg0: i32, %arg1: i32) -> (i32, i32) {
    %c0_i32 = arith.constant 0 : i32
    %c0_i32_0 = arith.constant 0 : i32
    return %c0_i32, %arg1 : i32, i32
  }
  func.func @transform_5(%arg0: i32, %arg1: i32) -> (i32, i32) {
    %c0_i32 = arith.constant 0 : i32
    %c0_i32_0 = arith.constant 0 : i32
    return %c0_i32, %arg1 : i32, i32
  }
  func.func @transform_6(%arg0: i32, %arg1: i32) -> (i32, i32) {
    %c0_i32 = arith.constant 0 : i32
    return %arg0, %arg1 : i32, i32
  }
}

</mosaic_0001>

<bundles_post_ra>
// kernel: tpu_custom_call.1
= control target key start
LH: loop header
LB: loop body
LE: loop exit
PB: predicated region body
PF: predicated region fallthrough
CT: control target
= control target key end

     0   :  { %11 = vsyncpa [#allocation5], 0  ;;  %s1177_s0 = inlined_call_operand.hbm [shape: bf16[8,128], index: 0, kind: input, shape index: {}]   ;;  %s1178_s1 = inlined_call_operand.hbm [shape: bf16[8,128], index: 1, kind: input, shape index: {}]   ;;  %s1179_s2 = inlined_call_operand.hbm [shape: bf16[128,256], index: 2, kind: input, shape index: {}]   ;;  %s1180_s3 = inlined_call_operand.hbm [shape: bf16[128,256], index: 3, kind: input, shape index: {}]   ;;  %s1181_s4 = inlined_call_operand.hbm [shape: bf16[128,256], index: 4, kind: input, shape index: {}]   ;;  %s1182_s5 = inlined_call_operand.hbm [shape: bf16[128,256], index: 5, kind: input, shape index: {}]   ;;  %s1183_s6 = inlined_call_operand.hbm [shape: f32[8,256], index: 6, kind: output, shape index: {}]  }
   0x1   :  { %12 = vsyncpa [#allocation8], 0 }
   0x2   :  { %13 = vsyncpa [#allocation11], 0 }
   0x3   :  { %14 = vsyncpa [#allocation14], 0 }
   0x4   :  { %15 = vsyncpa [#allocation6], 0  ;;  %s1032_s21 = smov [#allocation7]   ;;  %s868_s25 = scalar_lea.hbm %s1178_s1, 64 }
   0x5   :  { %s32_s22 = sshll.u32 %s1032_s21, 4  ;;  %p869_p0 = scmp.ne.s32.totalorder %s1178_s1, %s868_s25  ;;  %s33_s22 = int_to_ptr.vmem [resolvable:$true] %s32_s22 }
   0x6   :  { %p872_p1 = scmp.lt.u32.totalorder %s868_s25, %s1178_s1 }
   0x8   :  { %p874_p2 = pnand %p872_p1, %p869_p0 }
   0xa   :  { %877 = shalt.err (!%p874_p2)
}
   0xb   :  { %s878_s30 = scalar_lea.vmem %s33_s22, 64  ;;  %p883_p4 = scmp.lt.s32.totalorder %s33_s22, %s33_s22 }
   0xc   :  { %p879_p3 = scmp.ne.s32.totalorder %s33_s22, %s878_s30  ;;  %p884_p5 = scmp.lt.s32.totalorder %s878_s30, %s878_s30 }
   0xe   :  { %p885_p6 = por %p884_p5, %p883_p4 }
  0x10   :  { %p886_p7 = pnand %p885_p6, %p879_p3 }
  0x12   :  { %889 = shalt.err (!%p886_p7)
}
  0x13   :  { %35 = dma.hbm_to_vmem [thread:$0]  %s1178_s1, 64, %s33_s22, [#allocation8]  }
  0x14   :  { %s1033_s9 = smov [#allocation10]   ;;  %s1034_s11 = smov [#allocation4]  }
  0x15   :  { %s53_s10 = sshll.u32 %s1033_s9, 4  ;;  %s22_s12 = sshll.u32 %s1034_s11, 4  ;;  %s54_s10 = int_to_ptr.vmem [resolvable:$true] %s53_s10  ;;  %s23_s12 = int_to_ptr.vmem [resolvable:$true] %s22_s12 }
  0x16   :  { %s890_s15 = scalar_lea.hbm %s1180_s3, 2048 }
  0x17   :  { %p891_p8 = scmp.ne.s32.totalorder %s1180_s3, %s890_s15  ;;  %p894_p9 = scmp.lt.u32.totalorder %s890_s15, %s1180_s3 }
  0x19   :  { %p896_p10 = pnand %p894_p9, %p891_p8 }
  0x1b   :  { %899 = shalt.err (!%p896_p10)
}
  0x1c   :  { %s900_s1 = scalar_lea.vmem %s54_s10, 2048  ;;  %p905_p12 = scmp.lt.s32.totalorder %s54_s10, %s54_s10 }
  0x1d   :  { %p901_p11 = scmp.ne.s32.totalorder %s54_s10, %s900_s1  ;;  %p906_p13 = scmp.lt.s32.totalorder %s900_s1, %s900_s1 }
  0x1f   :  { %p907_p0 = por %p906_p13, %p905_p12 }
  0x21   :  { %p908_p1 = pnand %p907_p0, %p901_p11 }
  0x23   :  { %911 = shalt.err (!%p908_p1)
}
  0x24   :  { %s1035_s20 = smov 128   ;;  %s1036_s21 = smov 8  }
  0x25   :  { %59 = dma.hbm_to_vmem [thread:$0]  %s1180_s3, 2048, %s54_s10, [#allocation11], %s1035_s20, %s1035_s20, %s1036_s21  }
  0x26   :  { %s912_s26 = scalar_lea.hbm %s1177_s0, 64 }
  0x27   :  { %p913_p2 = scmp.ne.s32.totalorder %s1177_s0, %s912_s26  ;;  %p916_p3 = scmp.lt.u32.totalorder %s912_s26, %s1177_s0 }
  0x29   :  { %p918_p4 = pnand %p916_p3, %p913_p2 }
  0x2b   :  { %921 = shalt.err (!%p918_p4)
}
  0x2c   :  { %s922_s7 = scalar_lea.vmem %s23_s12, 64  ;;  %p927_p6 = scmp.lt.s32.totalorder %s23_s12, %s23_s12 }
  0x2d   :  { %p923_p5 = scmp.ne.s32.totalorder %s23_s12, %s922_s7  ;;  %p928_p7 = scmp.lt.s32.totalorder %s922_s7, %s922_s7 }
  0x2f   :  { %p929_p8 = por %p928_p7, %p927_p6 }
  0x31   :  { %p930_p9 = pnand %p929_p8, %p923_p5 }
  0x33   :  { %933 = shalt.err (!%p930_p9)
}
  0x34   :  { %25 = dma.hbm_to_vmem [thread:$0]  %s1177_s0, 64, %s23_s12, [#allocation5]  }
  0x35   :  { %s1037_s9 = smov [#allocation9]   ;;  %s1038_s11 = smov [#allocation12]  }
  0x36   :  { %s41_s10 = sshll.u32 %s1037_s9, 4  ;;  %s65_s13 = sshll.u32 %s1038_s11, 4  ;;  %s42_s10 = int_to_ptr.vmem [resolvable:$true] %s41_s10  ;;  %s66_s13 = int_to_ptr.vmem [resolvable:$true] %s65_s13 }
  0x37   :  { %s934_s16 = scalar_lea.hbm %s1179_s2, 2048 }
  0x38   :  { %p935_p10 = scmp.ne.s32.totalorder %s1179_s2, %s934_s16  ;;  %p938_p11 = scmp.lt.u32.totalorder %s934_s16, %s1179_s2 }
  0x3a   :  { %p940_p12 = pnand %p938_p11, %p935_p10 }
  0x3c   :  { %943 = shalt.err (!%p940_p12)
}
  0x3d   :  { %s944_s0 = scalar_lea.vmem %s42_s10, 2048  ;;  %p949_p0 = scmp.lt.s32.totalorder %s42_s10, %s42_s10 }
  0x3e   :  { %p945_p13 = scmp.ne.s32.totalorder %s42_s10, %s944_s0  ;;  %p950_p1 = scmp.lt.s32.totalorder %s944_s0, %s944_s0 }
  0x40   :  { %p951_p2 = por %p950_p1, %p949_p0 }
  0x42   :  { %p952_p3 = pnand %p951_p2, %p945_p13 }
  0x44   :  { %955 = shalt.err (!%p952_p3)
}
  0x45   :  { %47 = dma.hbm_to_vmem [thread:$0]  %s1179_s2, 2048, %s42_s10, [#allocation8], %s1035_s20, %s1035_s20, %s1036_s21  }
  0x46   :  { %s956_s25 = scalar_lea.hbm %s1181_s4, 2048 }
  0x47   :  { %p957_p4 = scmp.ne.s32.totalorder %s1181_s4, %s956_s25  ;;  %p960_p5 = scmp.lt.u32.totalorder %s956_s25, %s1181_s4 }
  0x49   :  { %p962_p6 = pnand %p960_p5, %p957_p4 }
  0x4b   :  { %965 = shalt.err (!%p962_p6)
}
  0x4c   :  { %s966_s30 = scalar_lea.vmem %s66_s13, 2048  ;;  %p971_p8 = scmp.lt.s32.totalorder %s66_s13, %s66_s13 }
  0x4d   :  { %p967_p7 = scmp.ne.s32.totalorder %s66_s13, %s966_s30  ;;  %p972_p9 = scmp.lt.s32.totalorder %s966_s30, %s966_s30 }
  0x4f   :  { %p973_p10 = por %p972_p9, %p971_p8 }
  0x51   :  { %p974_p11 = pnand %p973_p10, %p967_p7 }
  0x53   :  { %977 = shalt.err (!%p974_p11)
}
  0x54   :  { %71 = dma.hbm_to_vmem [thread:$0]  %s1181_s4, 2048, %s66_s13, [#allocation11], %s1035_s20, %s1035_s20, %s1036_s21  }
  0x55   :  { %s1039_s3 = smov [#allocation13]   ;;  %s978_s11 = scalar_lea.hbm %s1182_s5, 2048 }
  0x56   :  { %s77_s8 = sshll.u32 %s1039_s3, 4  ;;  %p979_p12 = scmp.ne.s32.totalorder %s1182_s5, %s978_s11  ;;  %s78_s8 = int_to_ptr.vmem [resolvable:$true] %s77_s8 }
  0x57   :  { %p982_p13 = scmp.lt.u32.totalorder %s978_s11, %s1182_s5 }
  0x59   :  { %p984_p0 = pnand %p982_p13, %p979_p12 }
  0x5b   :  { %987 = shalt.err (!%p984_p0)
}
  0x5c   :  { %s988_s18 = scalar_lea.vmem %s78_s8, 2048  ;;  %p993_p2 = scmp.lt.s32.totalorder %s78_s8, %s78_s8 }
  0x5d   :  { %p989_p1 = scmp.ne.s32.totalorder %s78_s8, %s988_s18  ;;  %p994_p3 = scmp.lt.s32.totalorder %s988_s18, %s988_s18 }
  0x5f   :  { %p995_p4 = por %p994_p3, %p993_p2 }
  0x61   :  { %p996_p5 = pnand %p995_p4, %p989_p1 }
  0x63   :  { %999 = shalt.err (!%p996_p5)
}
  0x64   :  { %83 = dma.hbm_to_vmem [thread:$0]  %s1182_s5, 2048, %s78_s8, [#allocation14], %s1035_s20, %s1035_s20, %s1036_s21  }
  0x65   :  { %1022 = dma.done.wait [#allocation5], 64  }
  0x66   :  { %1023 = vsyncadd [#allocation5], 4294967232 }
  0x67   :  { %1024 = dma.done.wait [#allocation8], 2112  }
  0x68   :  { %1025 = vsyncadd [#allocation8], 4294965184 }
  0x69   :  { %1026 = dma.done.wait [#allocation11], 4096  }
  0x6a   :  { %1027 = vsyncadd [#allocation11], 4294963200 }
  0x6b   :  { %1028 = dma.done.wait [#allocation14], 2048  }
  0x6c   :  { %1029 = vsyncadd [#allocation14], 4294965248  ;;  %v1040_v0 = vmov 0   ;;  %v772_v1 = vld [vmem:[#allocation9 + $0x4] ss:$8 sps:$4 sm:$0xff]   ;;  %v388_v56 = vlaneseq  ;;  %s1041_s5 = smov [#allocation15]  }
  0x6d   :  { %236 = vmatprep.mubr.bf16.mxu1 %v1040_v0  ;;  %544 = vmatprep.mubr.bf16.mxu0 %v1040_v0  ;;  %v774_v2 = vld [vmem:[#allocation9] ss:$8 sps:$4 sm:$0xff]   ;;  %v775_v3 = vld [vmem:[#allocation9 + $0x14] ss:$8 sps:$4 sm:$0xff]   ;;  %v777_v4 = vld [vmem:[#allocation9 + $0x10] ss:$8 sps:$4 sm:$0xff]  }
  0x6e   :  { %204 = vmatprep.subr.bf16.mxu1 %v772_v1  ;;  %v778_v5 = vld [vmem:[#allocation9 + $0x24] ss:$8 sps:$4 sm:$0xff]   ;;  %v780_v6 = vld [vmem:[#allocation9 + $0x20] ss:$8 sps:$4 sm:$0xff]   ;;  %v781_v7 = vld [vmem:[#allocation9 + $0x34] ss:$8 sps:$4 sm:$0xff]  }
  0x6f   :  { %205 = vmatpush1.bf16.msra.mxu1 %v774_v2  ;;  %v783_v8 = vld [vmem:[#allocation9 + $0x30] ss:$8 sps:$4 sm:$0xff]   ;;  %v784_v9 = vld [vmem:[#allocation9 + $0x44] ss:$8 sps:$4 sm:$0xff]   ;;  %v786_v10 = vld [vmem:[#allocation9 + $0x40] ss:$8 sps:$4 sm:$0xff]  }
  0x70   :  { %206 = vmatprep.subr.bf16.mxu1 %v775_v3  ;;  %v787_v11 = vld [vmem:[#allocation9 + $0x54] ss:$8 sps:$4 sm:$0xff]   ;;  %v789_v12 = vld [vmem:[#allocation9 + $0x50] ss:$8 sps:$4 sm:$0xff]   ;;  %v790_v13 = vld [vmem:[#allocation9 + $0x64] ss:$8 sps:$4 sm:$0xff]  }
  0x71   :  { %v792_v14 = vld [vmem:[#allocation9 + $0x60] ss:$8 sps:$4 sm:$0xff]   ;;  %v793_v15 = vld [vmem:[#allocation9 + $0x74] ss:$8 sps:$4 sm:$0xff]   ;;  %v795_v16 = vld [vmem:[#allocation9 + $0x70] ss:$8 sps:$4 sm:$0xff]  }
  0x72   :  { %v798_v17 = vld [vmem:[#allocation10 + $0x4] ss:$8 sps:$4 sm:$0xff]   ;;  %v107_v18 = vld [vmem:[#allocation4] sm:$0xf]  ;;  %v796_v19 = vld [vmem:[#allocation10] ss:$8 sps:$4 sm:$0xff]  }
  0x73   :  { %207 = vmatpush1.bf16.msra.mxu1 %v777_v4  ;;  %v801_v20 = vld [vmem:[#allocation10 + $0x14] ss:$8 sps:$4 sm:$0xff]   ;;  %v799_v21 = vld [vmem:[#allocation10 + $0x10] ss:$8 sps:$4 sm:$0xff]   ;;  %v804_v22 = vld [vmem:[#allocation10 + $0x24] ss:$8 sps:$4 sm:$0xff]  }
  0x74   :  { %208 = vmatprep.subr.bf16.mxu1 %v778_v5  ;;  %v802_v23 = vld [vmem:[#allocation10 + $0x20] ss:$8 sps:$4 sm:$0xff]   ;;  %v807_v24 = vld [vmem:[#allocation10 + $0x34] ss:$8 sps:$4 sm:$0xff]   ;;  %v805_v25 = vld [vmem:[#allocation10 + $0x30] ss:$8 sps:$4 sm:$0xff]  }
  0x75   :  { %v810_v26 = vld [vmem:[#allocation10 + $0x44] ss:$8 sps:$4 sm:$0xff]   ;;  %v808_v27 = vld [vmem:[#allocation10 + $0x40] ss:$8 sps:$4 sm:$0xff]   ;;  %v813_v28 = vld [vmem:[#allocation10 + $0x54] ss:$8 sps:$4 sm:$0xff]  }
  0x76   :  { %v811_v29 = vld [vmem:[#allocation10 + $0x50] ss:$8 sps:$4 sm:$0xff]   ;;  %v816_v30 = vld [vmem:[#allocation10 + $0x64] ss:$8 sps:$4 sm:$0xff]   ;;  %v814_v31 = vld [vmem:[#allocation10 + $0x60] ss:$8 sps:$4 sm:$0xff]  }
  0x77   :  { %209 = vmatpush1.bf16.msra.mxu1 %v780_v6  ;;  %v819_v32 = vld [vmem:[#allocation10 + $0x74] ss:$8 sps:$4 sm:$0xff]   ;;  %v817_v33 = vld [vmem:[#allocation10 + $0x70] ss:$8 sps:$4 sm:$0xff]   ;;  %v820_v35 = vld [vmem:[#allocation13 + $0x4] ss:$8 sps:$4 sm:$0xff]  }
  0x78   :  { %210 = vmatprep.subr.bf16.mxu1 %v781_v7  ;;  %v245_v34 = vld [vmem:[#allocation7] sm:$0xf]  ;;  %v822_v36 = vld [vmem:[#allocation13] ss:$8 sps:$4 sm:$0xff]   ;;  %512 = vmatprep.subr.bf16.mxu0 %v820_v35  ;;  %v825_v38 = vld [vmem:[#allocation13 + $0x10] ss:$8 sps:$4 sm:$0xff]  }
  0x79   :  { %v823_v37 = vld [vmem:[#allocation13 + $0x14] ss:$8 sps:$4 sm:$0xff]   ;;  %513 = vmatpush1.bf16.msra.mxu0 %v822_v36  ;;  %v826_v39 = vld [vmem:[#allocation13 + $0x24] ss:$8 sps:$4 sm:$0xff]   ;;  %v828_v40 = vld [vmem:[#allocation13 + $0x20] ss:$8 sps:$4 sm:$0xff]  }
  0x7a   :  { %514 = vmatprep.subr.bf16.mxu0 %v823_v37  ;;  %v829_v41 = vld [vmem:[#allocation13 + $0x34] ss:$8 sps:$4 sm:$0xff]   ;;  %v831_v42 = vld [vmem:[#allocation13 + $0x30] ss:$8 sps:$4 sm:$0xff]   ;;  %v832_v43 = vld [vmem:[#allocation13 + $0x44] ss:$8 sps:$4 sm:$0xff]  }
  0x7b   :  { %211 = vmatpush1.bf16.msra.mxu1 %v783_v8  ;;  %v834_v44 = vld [vmem:[#allocation13 + $0x40] ss:$8 sps:$4 sm:$0xff]   ;;  %v835_v45 = vld [vmem:[#allocation13 + $0x54] ss:$8 sps:$4 sm:$0xff]   ;;  %v837_v46 = vld [vmem:[#allocation13 + $0x50] ss:$8 sps:$4 sm:$0xff]  }
  0x7c   :  { %212 = vmatprep.subr.bf16.mxu1 %v784_v9  ;;  %v838_v47 = vld [vmem:[#allocation13 + $0x64] ss:$8 sps:$4 sm:$0xff]   ;;  %v840_v48 = vld [vmem:[#allocation13 + $0x60] ss:$8 sps:$4 sm:$0xff]   ;;  %v841_v49 = vld [vmem:[#allocation13 + $0x74] ss:$8 sps:$4 sm:$0xff]  }
  0x7d   :  { %515 = vmatpush1.bf16.msra.mxu0 %v825_v38  ;;  %v843_v50 = vld [vmem:[#allocation13 + $0x70] ss:$8 sps:$4 sm:$0xff]   ;;  %v846_v51 = vld [vmem:[#allocation12 + $0x4] ss:$8 sps:$4 sm:$0xff]   ;;  %v389_v57 = vand.u32 127, %v388_v56  ;;  %s682_s20 = sshll.u32 %s1041_s5, 4  ;;  %s683_s20 = int_to_ptr.vmem [resolvable:$true] %s682_s20 }
  0x7e   :  { %516 = vmatprep.subr.bf16.mxu0 %v826_v39  ;;  %v844_v9 = vld [vmem:[#allocation12] ss:$8 sps:$4 sm:$0xff]   ;;  %s1000_s21 = scalar_lea.vmem %s683_s20, 256  ;;  %p1005_p7 = scmp.lt.s32.totalorder %s683_s20, %s683_s20 }
  0x7f   :  { %213 = vmatpush1.bf16.msra.mxu1 %v786_v10  ;;  %vm390_vm0 = vcmp.eq.s32.totalorder %v389_v57, 0  ;;  %v849_v10 = vld [vmem:[#allocation12 + $0x14] ss:$8 sps:$4 sm:$0xff]   ;;  %p1001_p6 = scmp.ne.s32.totalorder %s683_s20, %s1000_s21  ;;  %p1006_p8 = scmp.lt.s32.totalorder %s1000_s21, %s1000_s21 }
  0x80   :  { %214 = vmatprep.subr.bf16.mxu1 %v787_v11 }
  0x81   :  { %517 = vmatpush1.bf16.msra.mxu0 %v828_v40  ;;  %p1007_p9 = por %p1006_p8, %p1005_p7 }
  0x82   :  { %518 = vmatprep.subr.bf16.mxu0 %v829_v41 }
  0x83   :  { %215 = vmatpush1.bf16.msra.mxu1 %v789_v12  ;;  %v847_v12 = vld [vmem:[#allocation12 + $0x10] ss:$8 sps:$4 sm:$0xff]   ;;  %p1008_p10 = pnand %p1007_p9, %p1001_p6 }
  0x84   :  { %216 = vmatprep.subr.bf16.mxu1 %v790_v13  ;;  %v852_v13 = vld [vmem:[#allocation12 + $0x24] ss:$8 sps:$4 sm:$0xff]  }
  0x85   :  { %519 = vmatpush1.bf16.msra.mxu0 %v831_v42 }
  0x86   :  { %520 = vmatprep.subr.bf16.mxu0 %v832_v43 }
  0x87   :  { %217 = vmatpush1.bf16.msra.mxu1 %v792_v14  ;;  %v850_v14 = vld [vmem:[#allocation12 + $0x20] ss:$8 sps:$4 sm:$0xff]  }
  0x88   :  { %218 = vmatprep.subr.bf16.mxu1 %v793_v15  ;;  %v855_v15 = vld [vmem:[#allocation12 + $0x34] ss:$8 sps:$4 sm:$0xff]  }
  0x89   :  { %521 = vmatpush1.bf16.msra.mxu0 %v834_v44 }
  0x8a   :  { %522 = vmatprep.subr.bf16.mxu0 %v835_v45 }
  0x8b   :  { %219 = vmatpush1.bf16.msra.mxu1 %v795_v16  ;;  %v853_v16 = vld [vmem:[#allocation12 + $0x30] ss:$8 sps:$4 sm:$0xff]  }
  0x8c   :  { %342 = vmatprep.subr.bf16.mxu1 %v798_v17  ;;  %v858_v17 = vld [vmem:[#allocation12 + $0x44] ss:$8 sps:$4 sm:$0xff]  }
  0x8d   :  { %523 = vmatpush1.bf16.msra.mxu0 %v837_v46 }
  0x8e   :  { %237 = vmatmul.mubr.bf16.vlgmr.msra.gmra.mrb[0].mxu1 %v107_v18  ;;  %524 = vmatprep.subr.bf16.mxu0 %v838_v47  ;;  %v856_v18 = vld [vmem:[#allocation12 + $0x40] ss:$8 sps:$4 sm:$0xff]  }
  0x8f   :  { %343 = vmatpush1.bf16.msra.mxu1 %v796_v19  ;;  %374 = vmatprep.mubr.bf16.mxu1 %v1040_v0  ;;  %v861_v19 = vld [vmem:[#allocation12 + $0x54] ss:$8 sps:$4 sm:$0xff]  }
  0x90   :  { %344 = vmatprep.subr.bf16.mxu1 %v801_v20  ;;  %v859_v20 = vld [vmem:[#allocation12 + $0x50] ss:$8 sps:$4 sm:$0xff]  }
  0x91   :  { %525 = vmatpush1.bf16.msra.mxu0 %v840_v48 }
  0x92   :  { %526 = vmatprep.subr.bf16.mxu0 %v841_v49 }
  0x93   :  { %345 = vmatpush1.bf16.msra.mxu1 %v799_v21  ;;  %v864_v21 = vld [vmem:[#allocation12 + $0x64] ss:$8 sps:$4 sm:$0xff]  }
  0x94   :  { %346 = vmatprep.subr.bf16.mxu1 %v804_v22  ;;  %v867_v22 = vld [vmem:[#allocation12 + $0x74] ss:$8 sps:$4 sm:$0xff]  }
  0x95   :  { %527 = vmatpush1.bf16.msra.mxu0 %v843_v50 }
  0x96   :  { %633 = vmatprep.subr.bf16.mxu0 %v846_v51 }
  0x97   :  { %347 = vmatpush1.bf16.msra.mxu1 %v802_v23  ;;  %v865_v23 = vld [vmem:[#allocation12 + $0x70] ss:$8 sps:$4 sm:$0xff]  }
  0x98   :  { %348 = vmatprep.subr.bf16.mxu1 %v807_v24 }
  0x9b   :  { %349 = vmatpush1.bf16.msra.mxu1 %v805_v25 }
  0x9c   :  { %350 = vmatprep.subr.bf16.mxu1 %v810_v26 }
  0x9f   :  { %351 = vmatpush1.bf16.msra.mxu1 %v808_v27 }
  0xa0   :  { %352 = vmatprep.subr.bf16.mxu1 %v813_v28 }
  0xa3   :  { %353 = vmatpush1.bf16.msra.mxu1 %v811_v29 }
  0xa4   :  { %354 = vmatprep.subr.bf16.mxu1 %v816_v30 }
  0xa7   :  { %355 = vmatpush1.bf16.msra.mxu1 %v814_v31 }
  0xa8   :  { %356 = vmatprep.subr.bf16.mxu1 %v819_v32 }
  0xab   :  { %357 = vmatpush1.bf16.msra.mxu1 %v817_v33 }
  0xae   :  { %375 = vmatmul.mubr.bf16.vlgmr.msra.gmra.mrb[4].mxu1 %v245_v34 }
 0x161   :  { %v238_v52 = vpop.f32.mrb[0].mxu1 }
 0x162   :  { %v240_v53 = vpop.f32.mrb[1].mxu1 }
 0x163   :  { %v242_v54 = vpop.f32.mrb[2].mxu1 }
 0x164   :  { %v243_v55 = vpop.f32.mrb[3].mxu1 }
 0x181   :  { %v376_v58 = vpop.f32.mrb[4].mxu1 }
 0x182   :  { %v383_v59 = vmul.f32 %v376_v58, %v238_v52  ;;  %v386_v60 = vmul.f32 %v376_v58, %v240_v53  ;;  %v378_v61 = vpop.f32.mrb[5].mxu1 }
 0x183   :  { %v384_v62 = vmul.f32 %v378_v61, %v240_v53  ;;  %v385_v63 = vmul.f32 %v378_v61, %v238_v52  ;;  %v380_v1 = vpop.f32.mrb[6].mxu1 }
 0x184   :  { %v381_v2 = vpop.f32.mrb[7].mxu1 }
 0x185   :  { %v387_v3 = vadd.f32 %v386_v60, %v385_v63  ;;  %v391_v4 = vsel %vm390_vm0, 0.0, %v384_v62 }
 0x186   :  { %v392_v5 = vsub.f32 %v383_v59, %v391_v4 }
 0x187   :  { %v395_v6 = vsel %vm390_vm0, %v384_v62, %v387_v3 }
 0x188   :  { %v393_v7 = vpack.c.bf16 %v392_v5, %v392_v5  ;;  %v396_v8 = vpack.c.bf16 %v395_v6, %v395_v6 }
 0x18a   :  { %394 = vst [vmem:[#allocation2] sm:$0xf] %v393_v7  ;;  %397 = vst [vmem:[#allocation3] sm:$0xf] %v396_v8 }
 0x191   :  { %v415_v11 = vld [vmem:[#allocation3] sm:$0xf]  ;;  %v398_v24 = vld [vmem:[#allocation2] sm:$0xf] }
 0x192   :  { %545 = vmatmul.mubr.bf16.vlgmr.msra.gmra.mrb[0].mxu0 %v415_v11 }
 0x193   :  { %634 = vmatpush1.bf16.msra.mxu0 %v844_v9  ;;  %665 = vmatprep.mubr.bf16.mxu0 %v1040_v0  ;;  %v862_v0 = vld [vmem:[#allocation12 + $0x60] ss:$8 sps:$4 sm:$0xff]  }
 0x194   :  { %635 = vmatprep.subr.bf16.mxu0 %v849_v10 }
 0x197   :  { %636 = vmatpush1.bf16.msra.mxu0 %v847_v12 }
 0x198   :  { %637 = vmatprep.subr.bf16.mxu0 %v852_v13 }
 0x19b   :  { %638 = vmatpush1.bf16.msra.mxu0 %v850_v14 }
 0x19c   :  { %639 = vmatprep.subr.bf16.mxu0 %v855_v15 }
 0x19f   :  { %640 = vmatpush1.bf16.msra.mxu0 %v853_v16 }
 0x1a0   :  { %641 = vmatprep.subr.bf16.mxu0 %v858_v17 }
 0x1a3   :  { %642 = vmatpush1.bf16.msra.mxu0 %v856_v18 }
 0x1a4   :  { %643 = vmatprep.subr.bf16.mxu0 %v861_v19 }
 0x1a7   :  { %644 = vmatpush1.bf16.msra.mxu0 %v859_v20 }
 0x1a8   :  { %645 = vmatprep.subr.bf16.mxu0 %v864_v21 }
 0x1ab   :  { %646 = vmatpush1.bf16.msra.mxu0 %v862_v0 }
 0x1ac   :  { %647 = vmatprep.subr.bf16.mxu0 %v867_v22 }
 0x1af   :  { %648 = vmatpush1.bf16.msra.mxu0 %v865_v23 }
 0x1b2   :  { %666 = vmatmul.mubr.bf16.vlgmr.msra.gmra.mrb[0].mxu0 %v398_v24 }
 0x285   :  { %v667_v25 = vpop.f32.mrb[0].mxu0 }
 0x286   :  { %674 = vst [vmem:[#allocation15] sm:$0xff] %v667_v25  ;;  %v669_v26 = vpop.f32.mrb[1].mxu0 }
 0x287   :  { %675 = vst [vmem:[#allocation15 + $0x8] sm:$0xff] %v669_v26  ;;  %v671_v27 = vpop.f32.mrb[2].mxu0 }
 0x288   :  { %v672_v28 = vpop.f32.mrb[3].mxu0 }
 0x289   :  { %1011 = shalt.err (!%p1008_p10)
}
 0x28a   :  { %s1012_s0 = scalar_lea.hbm %s1183_s6, 256 }
 0x28b   :  { %p1013_p11 = scmp.ne.s32.totalorder %s1183_s6, %s1012_s0  ;;  %p1016_p12 = scmp.lt.u32.totalorder %s1012_s0, %s1183_s6 }
 0x28d   :  { %p1018_p13 = pnand %p1016_p12, %p1013_p11 }
 0x28f   :  { %1021 = shalt.err (!%p1018_p13)
}
 0x290   :  { %685 = dma.vmem_to_hbm [thread:$0]  %s683_s20, 256, %s1183_s6, [#allocation6]  }
 0x291   :  { %1030 = dma.done.wait [#allocation6], 256  }
 0x292   :  { %1031 = vsyncadd [#allocation6], 4294967040 }
 0x293   :  { %689 = vsyncpa [#allocation5], 1 }
 0x294   :  { %690 = vsyncpa [#allocation8], 1 }
 0x295   :  { %691 = vsyncpa [#allocation11], 1 }
 0x296   :  { %692 = vsyncpa [#allocation14], 1 }
 0x297   :  { %693 = vsyncpa [#allocation6], 1 }

</bundles_post_ra>
